<compile_context>
chip_gen: v5e
topology: v5e:2x2
jax: 0.10.0
libtpu: 0.0.40
codegen_flags: <defaults>
</compile_context>

<pallas_src>
import functools

import jax
import jax.numpy as jnp
from jax import lax
from jax.experimental import pallas as pl
from jax.experimental.pallas import tpu as pltpu


def _round_up(x: int, m: int) -> int:
    return ((x + m - 1) // m) * m


def _cross_attn_kernel(x_ref, wq_ref, wkv_ref, wp_ref, bp_ref, hm_ref, o_ref,
                       *, scale: float, n_true: int):
    # x_ref:   (TB, N_pad, C_pad)  batch tile
    # wq_ref:  (C_pad, C_pad)      query weight (in x out)
    # wkv_ref: (C_pad, 2*C_pad)    fused [Wk | Wv] weight (in x out)
    # wp_ref:  (C_pad, C_pad)      output-projection weight (in x out)
    # bp_ref:  (1, C_pad)          output-projection bias
    # hm_ref:  (C_pad, C_pad)      head-grouping mask: 1 iff channels share a head
    # o_ref:   (TB, C_pad)         lane/sublane-dense output tile
    tb, n_pad, c = x_ref.shape

    x = x_ref[...]                                    # (TB, N, C)
    x_flat = x.reshape(tb * n_pad, c)                 # aligned (N_pad % 8 == 0)
    x_cls = x[:, 0, :]                                # (TB, C) class tokens

    # Fused K/V projection: single large MXU matmul.
    kv = jnp.dot(x_flat, wkv_ref[...], preferred_element_type=jnp.float32)  # (TB*N, 2C)
    k = kv[:, :c].reshape(tb, n_pad, c)               # (TB, N, C)
    v = kv[:, c:].reshape(tb, n_pad, c)               # (TB, N, C)

    # Q projection on the class tokens only; fold the softmax scale into q.
    q = jnp.dot(x_cls, wq_ref[...], preferred_element_type=jnp.float32) * scale  # (TB, C)

    # Per-head attention scores, replicated across each head's channels:
    #   scores[b, n, c] = sum_{c' in head(c)} q[b, c'] * k[b, n, c']
    qk = (k * q[:, None, :]).reshape(tb * n_pad, c)
    scores = jnp.dot(qk, hm_ref[...], preferred_element_type=jnp.float32)
    scores = scores.reshape(tb, n_pad, c)             # (TB, N, C)

    if n_pad != n_true:
        # Mask out padded tokens (compile-time branch; never traced when N is aligned).
        row_ok = lax.broadcasted_iota(jnp.int32, (1, n_pad, 1), 1) < n_true
        scores = jnp.where(row_ok, scores, -1e30)

    # Softmax over the token axis (identical per channel within a head).
    m = jnp.max(scores, axis=1, keepdims=True)        # (TB, 1, C)
    e = jnp.exp(scores - m)                           # (TB, N, C)
    denom = jnp.sum(e, axis=1, keepdims=True)         # (TB, 1, C)
    p = e * pl.reciprocal(denom, approx=True)         # (TB, N, C)

    # Attention-weighted sum over tokens.
    ctx = jnp.sum(p * v, axis=1)                      # (TB, C)

    # Output projection + bias.
    y = jnp.dot(ctx, wp_ref[...], preferred_element_type=jnp.float32) + bp_ref[...]
    o_ref[...] = y.astype(o_ref.dtype)                # dense (TB, C) store


def cross_attention(x, wq_t, wk_t, wv_t, wp_t, bp, *, num_heads: int):
    """x: (B, N, C) float32; w*_t: (C, C) = torch_weight.T; bp: (1, C). Returns (B, 1, C)."""
    B, N, C = x.shape
    assert C % num_heads == 0
    head_dim = C // num_heads
    scale = head_dim ** -0.5

    # ---- tiling / padding choices ----
    C_pad = _round_up(C, 128)          # lane-dense channels
    N_pad = _round_up(N, 8)            # sublane-aligned sequence
    # Batch tile: aim for TB*N_pad >= 256 rows (fills MXU M), TB multiple of 8,
    # but never pad the batch by more than one tile, and keep the x tile VMEM-modest.
    tb_target = _round_up(max(8, pl.cdiv(256, N_pad)), 8)
    max_tb_vmem = max(8, (4 * 1024 * 1024) // (4 * N_pad * C_pad) // 8 * 8)
    TB = min(tb_target, _round_up(B, 8), max_tb_vmem)
    B_pad = _round_up(B, TB)

    # ---- zero-pad inputs (padding is exactly cancelled inside the kernel) ----
    xp = jnp.pad(x, ((0, B_pad - B), (0, N_pad - N), (0, C_pad - C)))
    pad_cc = ((0, C_pad - C), (0, C_pad - C))
    wq_p = jnp.pad(wq_t, pad_cc)
    wk_p = jnp.pad(wk_t, pad_cc)
    wv_p = jnp.pad(wv_t, pad_cc)
    wkv_p = jnp.concatenate([wk_p, wv_p], axis=1)      # (C_pad, 2*C_pad) fused K/V weight
    wp_p = jnp.pad(wp_t, pad_cc)
    bp_p = jnp.pad(bp.reshape(1, C), ((0, 0), (0, C_pad - C)))

    # Head-grouping mask, built once here (hoisted out of the sequential grid loop).
    ch = jnp.arange(C_pad)
    head_of = ch // head_dim
    valid = ch < C
    hm = ((head_of[:, None] == head_of[None, :]) &
          valid[:, None] & valid[None, :]).astype(jnp.float32)     # (C_pad, C_pad)

    kernel = functools.partial(_cross_attn_kernel, scale=scale, n_true=N)

    out2d = pl.pallas_call(
        kernel,
        out_shape=jax.ShapeDtypeStruct((B_pad, C_pad), x.dtype),
        grid_spec=pltpu.PrefetchScalarGridSpec(
            num_scalar_prefetch=0,
            grid=(B_pad // TB,),
            in_specs=[
                pl.BlockSpec((TB, N_pad, C_pad), lambda b: (b, 0, 0)),   # x tile
                pl.BlockSpec((C_pad, C_pad), lambda b: (0, 0)),          # Wq
                pl.BlockSpec((C_pad, 2 * C_pad), lambda b: (0, 0)),      # fused [Wk|Wv]
                pl.BlockSpec((C_pad, C_pad), lambda b: (0, 0)),          # Wproj
                pl.BlockSpec((1, C_pad), lambda b: (0, 0)),              # proj bias
                pl.BlockSpec((C_pad, C_pad), lambda b: (0, 0)),          # head mask
            ],
            out_specs=pl.BlockSpec((TB, C_pad), lambda b: (b, 0)),
        ),
        compiler_params=pltpu.CompilerParams(
            dimension_semantics=("parallel",)),
    )(xp, wq_p, wkv_p, wp_p, bp_p, hm)

    # Slice off padding, restore (B, 1, C).
    return out2d[:B, None, :C]


def _reference(x, wq_t, wk_t, wv_t, wp_t, bp, num_heads):
    # Pure-JAX reference mirroring the PyTorch forward.
    B, N, C = x.shape
    hd = C // num_heads
    scale = hd ** -0.5
    q = (x[:, 0:1, :] @ wq_t).reshape(B, 1, num_heads, hd).transpose(0, 2, 1, 3)
    k = (x @ wk_t).reshape(B, N, num_heads, hd).transpose(0, 2, 1, 3)
    v = (x @ wv_t).reshape(B, N, num_heads, hd).transpose(0, 2, 1, 3)
    attn = jnp.einsum("bhqd,bhkd->bhqk", q, k) * scale
    attn = jax.nn.softmax(attn, axis=-1)
    out = jnp.einsum("bhqk,bhkd->bhqd", attn, v).transpose(0, 2, 1, 3).reshape(B, 1, C)
    return out @ wp_t + bp


if __name__ == "__main__":
    B, N, C = 2, 8, 32
    num_heads = 8

    key = jax.random.PRNGKey(0)
    kx, kq, kk, kv_key, kp, kb = jax.random.split(key, 6)

    x = jax.random.normal(kx, (B, N, C), dtype=jnp.float32)
    # nn.Linear weights are (out, in); store transposed (in, out) for the kernel.
    wq_t = (jax.random.normal(kq, (C, C), dtype=jnp.float32) * 0.05).T
    wk_t = (jax.random.normal(kk, (C, C), dtype=jnp.float32) * 0.05).T
    wv_t = (jax.random.normal(kv_key, (C, C), dtype=jnp.float32) * 0.05).T
    wp_t = (jax.random.normal(kp, (C, C), dtype=jnp.float32) * 0.05).T
    bp = (jax.random.normal(kb, (1, C), dtype=jnp.float32) * 0.01)

    out = cross_attention(x, wq_t, wk_t, wv_t, wp_t, bp, num_heads=num_heads)
    out = jax.block_until_ready(out)

    ref = _reference(x, wq_t, wk_t, wv_t, wp_t, bp, num_heads)
    assert out.shape == (B, 1, C)
    assert jnp.allclose(out, ref, atol=2e-3, rtol=2e-3), "mismatch vs reference"
    print("KERNEL_OK")
</pallas_src>

<mosaic_0001>
module attributes {stable_mosaic.version = 11 : i64} {
  func.func @_cross_attn_kernel(%arg0: i32, %arg1: memref<8x8x128xf32, #tpu.memory_space<vmem>>, %arg2: memref<128x128xf32, #tpu.memory_space<vmem>>, %arg3: memref<128x256xf32, #tpu.memory_space<vmem>>, %arg4: memref<128x128xf32, #tpu.memory_space<vmem>>, %arg5: memref<1x128xf32, #tpu.memory_space<vmem>>, %arg6: memref<128x128xf32, #tpu.memory_space<vmem>>, %arg7: memref<8x128xf32, #tpu.memory_space<vmem>>) attributes {dimension_semantics = [#tpu.dimension_semantics<parallel>], iteration_bounds = array<i64: 1>, scalar_prefetch = 0 : i64, scratch_operands = 0 : i64, tpu.core_type = #tpu.core_type<tc>, window_params = [{transform_indices = @transform_0, window_bounds = array<i64: 8, 8, 128>}, {pipeline_mode = #tpu.pipeline_mode<synchronous>, transform_indices = @transform_1, window_bounds = array<i64: 128, 128>}, {pipeline_mode = #tpu.pipeline_mode<synchronous>, transform_indices = @transform_2, window_bounds = array<i64: 128, 256>}, {pipeline_mode = #tpu.pipeline_mode<synchronous>, transform_indices = @transform_3, window_bounds = array<i64: 128, 128>}, {pipeline_mode = #tpu.pipeline_mode<synchronous>, transform_indices = @transform_4, window_bounds = array<i64: 1, 128>}, {pipeline_mode = #tpu.pipeline_mode<synchronous>, transform_indices = @transform_5, window_bounds = array<i64: 128, 128>}, {transform_indices = @transform_6, window_bounds = array<i64: 8, 128>}]} {
    %c0 = arith.constant 0 : index
    %c0_0 = arith.constant 0 : index
    %c0_1 = arith.constant 0 : index
    %0 = vector.load %arg1[%c0, %c0_0, %c0_1] : memref<8x8x128xf32, #tpu.memory_space<vmem>>, vector<8x8x128xf32>
    %1 = vector.shape_cast %0 : vector<8x8x128xf32> to vector<64x128xf32>
    %2 = vector.extract_strided_slice %0 {offsets = [0, 0, 0], sizes = [8, 1, 128], strides = [1, 1, 1]} : vector<8x8x128xf32> to vector<8x1x128xf32>
    %3 = vector.shape_cast %2 : vector<8x1x128xf32> to vector<8x128xf32>
    %c0_2 = arith.constant 0 : index
    %c0_3 = arith.constant 0 : index
    %4 = vector.load %arg3[%c0_2, %c0_3] : memref<128x256xf32, #tpu.memory_space<vmem>>, vector<128x256xf32>
    %cst = arith.constant dense<0.000000e+00> : vector<64x256xf32>
    %5 = tpu.matmul %1, %4, %cst {dimension_numbers = #tpu.dot_dimension_numbers<[1], [0], [0], [1], [0, 0, 1, 1], [], []>} : vector<64x128xf32>, vector<128x256xf32>, vector<64x256xf32> -> vector<64x256xf32>
    %6 = vector.extract_strided_slice %5 {offsets = [0, 0], sizes = [64, 128], strides = [1, 1]} : vector<64x256xf32> to vector<64x128xf32>
    %7 = vector.shape_cast %6 : vector<64x128xf32> to vector<8x8x128xf32>
    %8 = vector.extract_strided_slice %5 {offsets = [0, 128], sizes = [64, 128], strides = [1, 1]} : vector<64x256xf32> to vector<64x128xf32>
    %9 = vector.shape_cast %8 : vector<64x128xf32> to vector<8x8x128xf32>
    %c0_4 = arith.constant 0 : index
    %c0_5 = arith.constant 0 : index
    %10 = vector.load %arg2[%c0_4, %c0_5] : memref<128x128xf32, #tpu.memory_space<vmem>>, vector<128x128xf32>
    %cst_6 = arith.constant dense<0.000000e+00> : vector<8x128xf32>
    %11 = tpu.matmul %3, %10, %cst_6 {dimension_numbers = #tpu.dot_dimension_numbers<[1], [0], [0], [1], [0, 0, 1, 1], [], []>} : vector<8x128xf32>, vector<128x128xf32>, vector<8x128xf32> -> vector<8x128xf32>
    %cst_7 = arith.constant 5.000000e-01 : f32
    %12 = vector.broadcast %cst_7 : f32 to vector<8x128xf32>
    %13 = arith.mulf %11, %12 : vector<8x128xf32>
    %14 = vector.shape_cast %13 : vector<8x128xf32> to vector<8x1x128xf32>
    %15 = vector.broadcast %14 : vector<8x1x128xf32> to vector<8x8x128xf32>
    %16 = arith.mulf %7, %15 : vector<8x8x128xf32>
    %17 = vector.shape_cast %16 : vector<8x8x128xf32> to vector<64x128xf32>
    %c0_8 = arith.constant 0 : index
    %c0_9 = arith.constant 0 : index
    %18 = vector.load %arg6[%c0_8, %c0_9] : memref<128x128xf32, #tpu.memory_space<vmem>>, vector<128x128xf32>
    %cst_10 = arith.constant dense<0.000000e+00> : vector<64x128xf32>
    %19 = tpu.matmul %17, %18, %cst_10 {dimension_numbers = #tpu.dot_dimension_numbers<[1], [0], [0], [1], [0, 0, 1, 1], [], []>} : vector<64x128xf32>, vector<128x128xf32>, vector<64x128xf32> -> vector<64x128xf32>
    %20 = vector.shape_cast %19 : vector<64x128xf32> to vector<8x8x128xf32>
    %cst_11 = arith.constant dense<0xFF800000> : vector<8x128xf32>
    %21 = vector.multi_reduction <maximumf>, %20, %cst_11 [1] : vector<8x8x128xf32> to vector<8x128xf32>
    %22 = vector.shape_cast %21 : vector<8x128xf32> to vector<8x1x128xf32>
    %23 = vector.broadcast %22 : vector<8x1x128xf32> to vector<8x8x128xf32>
    %24 = arith.subf %20, %23 : vector<8x8x128xf32>
    %25 = math.exp %24 : vector<8x8x128xf32>
    %cst_12 = arith.constant dense<0.000000e+00> : vector<8x128xf32>
    %26 = vector.multi_reduction <add>, %25, %cst_12 [1] : vector<8x8x128xf32> to vector<8x128xf32>
    %27 = vector.shape_cast %26 : vector<8x128xf32> to vector<8x1x128xf32>
    %28 = tpu.reciprocal %27 {approx = true} : vector<8x1x128xf32> -> vector<8x1x128xf32>
    %29 = vector.broadcast %28 : vector<8x1x128xf32> to vector<8x8x128xf32>
    %30 = arith.mulf %25, %29 : vector<8x8x128xf32>
    %31 = arith.mulf %30, %9 : vector<8x8x128xf32>
    %cst_13 = arith.constant dense<0.000000e+00> : vector<8x128xf32>
    %32 = vector.multi_reduction <add>, %31, %cst_13 [1] : vector<8x8x128xf32> to vector<8x128xf32>
    %c0_14 = arith.constant 0 : index
    %c0_15 = arith.constant 0 : index
    %33 = vector.load %arg4[%c0_14, %c0_15] : memref<128x128xf32, #tpu.memory_space<vmem>>, vector<128x128xf32>
    %cst_16 = arith.constant dense<0.000000e+00> : vector<8x128xf32>
    %34 = tpu.matmul %32, %33, %cst_16 {dimension_numbers = #tpu.dot_dimension_numbers<[1], [0], [0], [1], [0, 0, 1, 1], [], []>} : vector<8x128xf32>, vector<128x128xf32>, vector<8x128xf32> -> vector<8x128xf32>
    %c0_17 = arith.constant 0 : index
    %c0_18 = arith.constant 0 : index
    %35 = vector.load %arg5[%c0_17, %c0_18] : memref<1x128xf32, #tpu.memory_space<vmem>>, vector<1x128xf32>
    %36 = vector.broadcast %35 : vector<1x128xf32> to vector<8x128xf32>
    %37 = arith.addf %34, %36 : vector<8x128xf32>
    %c0_19 = arith.constant 0 : index
    %c0_20 = arith.constant 0 : index
    %38 = vector.load %arg7[%c0_19, %c0_20] : memref<8x128xf32, #tpu.memory_space<vmem>>, vector<8x128xf32>
    tpu.vector_store %arg7[%c0_19, %c0_20], %37 {strides = array<i32>} : memref<8x128xf32, #tpu.memory_space<vmem>>, vector<8x128xf32>,
    return
  }
  func.func @transform_0(%arg0: i32) -> (i32, i32, i32) {
    %c0_i32 = arith.constant 0 : i32
    %c0_i32_0 = arith.constant 0 : i32
    %c0_i32_1 = arith.constant 0 : i32
    return %arg0, %c0_i32, %c0_i32_0 : i32, i32, i32
  }
  func.func @transform_1(%arg0: i32) -> (i32, i32) {
    %c0_i32 = arith.constant 0 : i32
    %c0_i32_0 = arith.constant 0 : i32
    %c0_i32_1 = arith.constant 0 : i32
    return %c0_i32, %c0_i32_0 : i32, i32
  }
  func.func @transform_2(%arg0: i32) -> (i32, i32) {
    %c0_i32 = arith.constant 0 : i32
    %c0_i32_0 = arith.constant 0 : i32
    %c0_i32_1 = arith.constant 0 : i32
    return %c0_i32, %c0_i32_0 : i32, i32
  }
  func.func @transform_3(%arg0: i32) -> (i32, i32) {
    %c0_i32 = arith.constant 0 : i32
    %c0_i32_0 = arith.constant 0 : i32
    %c0_i32_1 = arith.constant 0 : i32
    return %c0_i32, %c0_i32_0 : i32, i32
  }
  func.func @transform_4(%arg0: i32) -> (i32, i32) {
    %c0_i32 = arith.constant 0 : i32
    %c0_i32_0 = arith.constant 0 : i32
    %c0_i32_1 = arith.constant 0 : i32
    return %c0_i32, %c0_i32_0 : i32, i32
  }
  func.func @transform_5(%arg0: i32) -> (i32, i32) {
    %c0_i32 = arith.constant 0 : i32
    %c0_i32_0 = arith.constant 0 : i32
    %c0_i32_1 = arith.constant 0 : i32
    return %c0_i32, %c0_i32_0 : i32, i32
  }
  func.func @transform_6(%arg0: i32) -> (i32, i32) {
    %c0_i32 = arith.constant 0 : i32
    %c0_i32_0 = arith.constant 0 : i32
    return %arg0, %c0_i32 : i32, i32
  }
}

</mosaic_0001>

<bundles_post_ra>
// kernel: tpu_custom_call.1
= control target key start
LH: loop header
LB: loop body
LE: loop exit
PB: predicated region body
PF: predicated region fallthrough
CT: control target
= control target key end

     0   :  { %11 = vsyncpa [#allocation3], 0  ;;  %s1032_s0 = inlined_call_operand.hbm [shape: f32[8,8,128], index: 0, kind: input, shape index: {}]   ;;  %s1033_s1 = inlined_call_operand.hbm [shape: f32[128,128], index: 1, kind: input, shape index: {}]   ;;  %s1034_s2 = inlined_call_operand.hbm [shape: f32[128,256], index: 2, kind: input, shape index: {}]   ;;  %s1035_s3 = inlined_call_operand.hbm [shape: f32[128,128], index: 3, kind: input, shape index: {}]   ;;  %s1036_s4 = inlined_call_operand.vmem [shape: f32[1,128], index: 4, kind: input, shape index: {}]   ;;  %s1037_s5 = inlined_call_operand.hbm [shape: f32[128,128], index: 5, kind: input, shape index: {}]   ;;  %s1038_s6 = inlined_call_operand.hbm [shape: f32[8,128], index: 6, kind: output, shape index: {}]  }
   0x1   :  { %12 = vsyncpa [#allocation6], 0 }
   0x2   :  { %13 = vsyncpa [#allocation9], 0 }
   0x3   :  { %14 = vsyncpa [#allocation4], 0  ;;  %s32_s23 = sshll.u32 %s1033_s1, 4  ;;  %s843_s24 = smov [#allocation5]   ;;  %s33_s23 = int_to_ptr.hbm [resolvable:$true] %s32_s23 }
   0x4   :  { %s34_s25 = sshll.u32 %s843_s24, 4  ;;  %s58_s28 = sshll.u32 %s1035_s3, 4  ;;  %s35_s25 = int_to_ptr.vmem [resolvable:$true] %s34_s25  ;;  %s59_s28 = int_to_ptr.hbm [resolvable:$true] %s58_s28 }
   0x5   :  { %s844_s29 = smov 128   ;;  %s845_s30 = smov 8  }
   0x6   :  { %40 = dma.hbm_to_vmem [thread:$0]  %s33_s23, 2048, %s35_s25, [#allocation6], %s844_s29, %s844_s29, %s845_s30  }
   0x7   :  { %s846_s7 = smov [#allocation8]   ;;  %s19_s1 = sshll.u32 %s1032_s0, 4  ;;  %s20_s1 = int_to_ptr.hbm [resolvable:$true] %s19_s1 }
   0x8   :  { %s60_s8 = sshll.u32 %s846_s7, 4  ;;  %s45_s12 = sshll.u32 %s1034_s2, 4  ;;  %s61_s8 = int_to_ptr.vmem [resolvable:$true] %s60_s8  ;;  %s46_s12 = int_to_ptr.hbm [resolvable:$true] %s45_s12 }
   0x9   :  { %66 = dma.hbm_to_vmem [thread:$0]  %s59_s28, 2048, %s61_s8, [#allocation9], %s844_s29, %s844_s29, %s845_s30  }
   0xa   :  { %s847_s13 = smov [#allocation2]   ;;  %s848_s15 = smov [#allocation7]  }
   0xb   :  { %s21_s14 = sshll.u32 %s847_s13, 4  ;;  %s47_s0 = sshll.u32 %s848_s15, 4  ;;  %s22_s14 = int_to_ptr.vmem [resolvable:$true] %s21_s14  ;;  %s48_s0 = int_to_ptr.vmem [resolvable:$true] %s47_s0 }
   0xc   :  { %27 = dma.hbm_to_vmem [thread:$0]  %s20_s1, 1024, %s22_s14, [#allocation3], %s844_s29, %s844_s29, %s845_s30  }
   0xd   :  { %s849_s16 = smov 256   ;;  %s850_s17 = smov 16  }
   0xe   :  { %53 = dma.hbm_to_vmem [thread:$0]  %s46_s12, 4096, %s48_s0, [#allocation6], %s849_s16, %s849_s16, %s850_s17  }
   0xf   :  { %s73_s20 = sshll.u32 %s1037_s5, 4  ;;  %s851_s2 = smov [#allocation10]   ;;  %s74_s20 = int_to_ptr.hbm [resolvable:$true] %s73_s20 }
  0x10   :  { %s75_s21 = sshll.u32 %s851_s2, 4  ;;  %s76_s21 = int_to_ptr.vmem [resolvable:$true] %s75_s21 }
  0x11   :  { %81 = dma.hbm_to_vmem [thread:$0]  %s74_s20, 2048, %s76_s21, [#allocation9], %s844_s29, %s844_s29, %s845_s30  }
  0x12   :  { %835 = dma.done.wait [#allocation3], 1024  }
  0x13   :  { %836 = vsyncadd [#allocation3], 4294966272 }
  0x14   :  { %837 = dma.done.wait [#allocation6], 6144  }
  0x15   :  { %838 = vsyncadd [#allocation6], 4294961152 }
  0x16   :  { %839 = dma.done.wait [#allocation9], 4096  }
  0x17   :  { %840 = vsyncadd [#allocation9], 4294963200  ;;  %v140_v0 = vld [vmem:[#allocation7 + $0xf0] sm:$0xff]  ;;  %v239_v1 = vld [vmem:[#allocation5 + $0x78] sm:$0xff]  ;;  %vm249_vm0 = vcmask 1041409   ;;  %vm252_vm1 = vcmask 1042434  }
  0x18   :  { %v138_v2 = vld [vmem:[#allocation7 + $0xe0] sm:$0xff]  ;;  %142 = vmatpush.msra.mxu0 %v140_v0  ;;  %270 = vmatpush.msra.mxu2 %v239_v1  ;;  %v238_v3 = vld [vmem:[#allocation5 + $0x70] sm:$0xff]  ;;  %v237_v5 = vld [vmem:[#allocation5 + $0x68] sm:$0xff]  ;;  %vm255_vm2 = vcmask 1043459   ;;  %vm258_vm3 = vcmask 1044484   ;;  %vm261_vm4 = vcmask 1045509  }
  0x19   :  { %v136_v4 = vld [vmem:[#allocation7 + $0xd0] sm:$0xff]  ;;  %v134_v6 = vld [vmem:[#allocation7 + $0xc0] sm:$0xff]  ;;  %v235_v9 = vld [vmem:[#allocation5 + $0x58] sm:$0xff]  ;;  %vm264_vm5 = vcmask 1046534   ;;  %vm267_vm6 = vcmask 1047559   ;;  %s852_s23 = smov [#allocation11]  }
  0x1a   :  { %143 = vmatpush.msra.mxu0 %v138_v2  ;;  %271 = vmatpush.msra.mxu2 %v238_v3  ;;  %v236_v7 = vld [vmem:[#allocation5 + $0x60] sm:$0xff]  ;;  %v132_v8 = vld [vmem:[#allocation7 + $0xb0] sm:$0xff]  ;;  %v233_v13 = vld [vmem:[#allocation5 + $0x48] sm:$0xff]  ;;  %s634_s24 = sshll.u32 %s852_s23, 4  ;;  %s636_s27 = sshll.u32 %s1038_s6, 4  ;;  %s635_s24 = int_to_ptr.vmem [resolvable:$true] %s634_s24  ;;  %s637_s27 = int_to_ptr.hbm [resolvable:$true] %s636_s27 }
  0x1b   :  { %v130_v10 = vld [vmem:[#allocation7 + $0xa0] sm:$0xff]  ;;  %v234_v11 = vld [vmem:[#allocation5 + $0x50] sm:$0xff]  ;;  %v917_v15 = vld [vmem:[#allocation2 + $0x8] sm:$0xff] }
  0x1c   :  { %144 = vmatpush.msra.mxu0 %v136_v4  ;;  %272 = vmatpush.msra.mxu2 %v237_v5  ;;  %v128_v12 = vld [vmem:[#allocation7 + $0x90] sm:$0xff]  ;;  %v915_v14 = vld [vmem:[#allocation2] sm:$0xff]  ;;  %v921_v17 = vld [vmem:[#allocation2 + $0x18] sm:$0xff]  ;;  %v248_v20 = vrot.slane %v917_v15, 7 }
  0x1d   :  { %v919_v16 = vld [vmem:[#allocation2 + $0x10] sm:$0xff]  ;;  %v126_v18 = vld [vmem:[#allocation7 + $0x80] sm:$0xff]  ;;  %v254_v22 = vrot.slane %v921_v17, 5  ;;  %v231_v25 = vld [vmem:[#allocation5 + $0x38] sm:$0xff] }
  0x1e   :  { %145 = vmatpush.msra.mxu0 %v134_v6  ;;  %273 = vmatpush.msra.mxu2 %v236_v7  ;;  %v232_v19 = vld [vmem:[#allocation5 + $0x40] sm:$0xff]  ;;  %v251_v21 = vrot.slane %v919_v16, 6  ;;  %v124_v24 = vld [vmem:[#allocation7 + $0x70] sm:$0xff]  ;;  %v250_v26 = vsel %vm249_vm0, %v248_v20, %v915_v14  ;;  %v931_v30 = vld [vmem:[#allocation2 + $0x28] sm:$0xff] }
  0x1f   :  { %v926_v23 = vld [vmem:[#allocation2 + $0x20] sm:$0xff]  ;;  %v230_v29 = vld [vmem:[#allocation5 + $0x30] sm:$0xff]  ;;  %v229_v34 = vld [vmem:[#allocation5 + $0x28] sm:$0xff]  ;;  %v260_v36 = vrot.slane %v931_v30, 3 }
  0x20   :  { %146 = vmatpush.msra.mxu0 %v132_v8  ;;  %274 = vmatpush.msra.mxu2 %v235_v9  ;;  %v253_v27 = vsel %vm252_vm1, %v251_v21, %v250_v26  ;;  %v122_v28 = vld [vmem:[#allocation7 + $0x60] sm:$0xff]  ;;  %v257_v31 = vrot.slane %v926_v23, 4  ;;  %v120_v33 = vld [vmem:[#allocation7 + $0x50] sm:$0xff]  ;;  %v227_v41 = vld [vmem:[#allocation5 + $0x18] sm:$0xff] }
  0x21   :  { %v256_v32 = vsel %vm255_vm2, %v254_v22, %v253_v27  ;;  %v935_v35 = vld [vmem:[#allocation2 + $0x30] sm:$0xff]  ;;  %v118_v37 = vld [vmem:[#allocation7 + $0x40] sm:$0xff]  ;;  %v939_v42 = vld [vmem:[#allocation2 + $0x38] sm:$0xff] }
  0x22   :  { %147 = vmatpush.msra.mxu0 %v130_v10  ;;  %275 = vmatpush.msra.mxu2 %v234_v11  ;;  %v228_v38 = vld [vmem:[#allocation5 + $0x20] sm:$0xff]  ;;  %v259_v39 = vsel %vm258_vm3, %v257_v31, %v256_v32  ;;  %v116_v40 = vld [vmem:[#allocation7 + $0x30] sm:$0xff]  ;;  %v263_v43 = vrot.slane %v935_v35, 2  ;;  %v266_v47 = vrot.slane %v939_v42, 1  ;;  %v225_v49 = vld [vmem:[#allocation5 + $0x8] sm:$0xff] }
  0x23   :  { %v262_v44 = vsel %vm261_vm4, %v260_v36, %v259_v39  ;;  %v114_v45 = vld [vmem:[#allocation7 + $0x20] sm:$0xff]  ;;  %v226_v46 = vld [vmem:[#allocation5 + $0x10] sm:$0xff]  ;;  %v338_v54 = vld [vmem:[#allocation10 + $0x78] sm:$0xff] }
  0x24   :  { %148 = vmatpush.msra.mxu0 %v128_v12  ;;  %276 = vmatpush.msra.mxu2 %v233_v13  ;;  %v112_v48 = vld [vmem:[#allocation7 + $0x10] sm:$0xff]  ;;  %v265_v50 = vsel %vm264_vm5, %v263_v43, %v262_v44  ;;  %v110_v51 = vld [vmem:[#allocation7] sm:$0xff]  ;;  %v336_v56 = vld [vmem:[#allocation10 + $0x68] sm:$0xff] }
  0x25   :  { %v224_v52 = vld [vmem:[#allocation5] sm:$0xff]  ;;  %v268_v53 = vsel %vm267_vm6, %v266_v47, %v265_v50  ;;  %v337_v55 = vld [vmem:[#allocation10 + $0x70] sm:$0xff]  ;;  %339 = vmatpush.msra.mxu3 %v338_v54  ;;  %v334_v58 = vld [vmem:[#allocation10 + $0x58] sm:$0xff] }
  0x26   :  { %149 = vmatpush.msra.mxu0 %v126_v18  ;;  %277 = vmatpush.msra.mxu2 %v232_v19  ;;  %v335_v57 = vld [vmem:[#allocation10 + $0x60] sm:$0xff]  ;;  %v333_v59 = vld [vmem:[#allocation10 + $0x50] sm:$0xff]  ;;  %v332_v60 = vld [vmem:[#allocation10 + $0x48] sm:$0xff] }
  0x27   :  { %340 = vmatpush.msra.mxu3 %v337_v55  ;;  %v331_v61 = vld [vmem:[#allocation10 + $0x40] sm:$0xff]  ;;  %v330_v62 = vld [vmem:[#allocation10 + $0x38] sm:$0xff]  ;;  %v329_v63 = vld [vmem:[#allocation10 + $0x30] sm:$0xff] }
  0x28   :  { %150 = vmatpush.msra.mxu0 %v124_v24  ;;  %278 = vmatpush.msra.mxu2 %v231_v25  ;;  %v328_v0 = vld [vmem:[#allocation10 + $0x28] sm:$0xff]  ;;  %v327_v1 = vld [vmem:[#allocation10 + $0x20] sm:$0xff]  ;;  %v326_v2 = vld [vmem:[#allocation10 + $0x18] sm:$0xff] }
  0x29   :  { %341 = vmatpush.msra.mxu3 %v336_v56  ;;  %v325_v3 = vld [vmem:[#allocation10 + $0x10] sm:$0xff]  ;;  %v324_v4 = vld [vmem:[#allocation10 + $0x8] sm:$0xff]  ;;  %v323_v5 = vld [vmem:[#allocation10] sm:$0xff] }
  0x2a   :  { %151 = vmatpush.msra.mxu0 %v122_v28  ;;  %279 = vmatpush.msra.mxu2 %v230_v29  ;;  %v141_v7 = vld [vmem:[#allocation7 + $0xf8] sm:$0xff]  ;;  %v139_v8 = vld [vmem:[#allocation7 + $0xe8] sm:$0xff] }
  0x2b   :  { %342 = vmatpush.msra.mxu3 %v335_v57  ;;  %183 = vmatpush.msra.mxu1 %v141_v7  ;;  %v137_v9 = vld [vmem:[#allocation7 + $0xd8] sm:$0xff]  ;;  %v135_v10 = vld [vmem:[#allocation7 + $0xc8] sm:$0xff] }
  0x2c   :  { %152 = vmatpush.msra.mxu0 %v120_v33  ;;  %280 = vmatpush.msra.mxu2 %v229_v34  ;;  %v133_v18 = vld [vmem:[#allocation7 + $0xb8] sm:$0xff]  ;;  %v131_v20 = vld [vmem:[#allocation7 + $0xa8] sm:$0xff] }
  0x2d   :  { %343 = vmatpush.msra.mxu3 %v334_v58  ;;  %184 = vmatpush.msra.mxu1 %v139_v8  ;;  %v129_v21 = vld [vmem:[#allocation7 + $0x98] sm:$0xff]  ;;  %v127_v25 = vld [vmem:[#allocation7 + $0x88] sm:$0xff] }
  0x2e   :  { %153 = vmatpush.msra.mxu0 %v118_v37  ;;  %281 = vmatpush.msra.mxu2 %v228_v38  ;;  %v125_v28 = vld [vmem:[#allocation7 + $0x78] sm:$0xff]  ;;  %v123_v29 = vld [vmem:[#allocation7 + $0x68] sm:$0xff] }
  0x2f   :  { %344 = vmatpush.msra.mxu3 %v333_v59  ;;  %185 = vmatpush.msra.mxu1 %v137_v9  ;;  %v121_v31 = vld [vmem:[#allocation7 + $0x58] sm:$0xff]  ;;  %v119_v34 = vld [vmem:[#allocation7 + $0x48] sm:$0xff] }
  0x30   :  { %154 = vmatpush.msra.mxu0 %v116_v40  ;;  %282 = vmatpush.msra.mxu2 %v227_v41  ;;  %v117_v37 = vld [vmem:[#allocation7 + $0x38] sm:$0xff]  ;;  %v115_v39 = vld [vmem:[#allocation7 + $0x28] sm:$0xff] }
  0x31   :  { %345 = vmatpush.msra.mxu3 %v332_v60  ;;  %186 = vmatpush.msra.mxu1 %v135_v10  ;;  %v113_v40 = vld [vmem:[#allocation7 + $0x18] sm:$0xff]  ;;  %v111_v44 = vld [vmem:[#allocation7 + $0x8] sm:$0xff] }
  0x32   :  { %155 = vmatpush.msra.mxu0 %v114_v45  ;;  %283 = vmatpush.msra.mxu2 %v226_v46 }
  0x33   :  { %346 = vmatpush.msra.mxu3 %v331_v61  ;;  %187 = vmatpush.msra.mxu1 %v133_v18 }
  0x34   :  { %156 = vmatpush.msra.mxu0 %v112_v48  ;;  %284 = vmatpush.msra.mxu2 %v225_v49 }
  0x35   :  { %347 = vmatpush.msra.mxu3 %v330_v62  ;;  %188 = vmatpush.msra.mxu1 %v131_v20 }
  0x36   :  { %157 = vmatpush.msra.mxu0 %v110_v51  ;;  %285 = vmatpush.msra.mxu2 %v224_v52 }
  0x37   :  { %158 = vmatmul.f32.vlgmr.msra.gmra.mxu0 %v915_v14  ;;  %286 = vmatmul.f32.vlgmr.msra.gmra.mxu2 %v268_v53 }
  0x38   :  { %348 = vmatpush.msra.mxu3 %v329_v63  ;;  %189 = vmatpush.msra.mxu1 %v129_v21 }
  0x3a   :  { %349 = vmatpush.msra.mxu3 %v328_v0  ;;  %190 = vmatpush.msra.mxu1 %v127_v25 }
  0x3c   :  { %350 = vmatpush.msra.mxu3 %v327_v1  ;;  %191 = vmatpush.msra.mxu1 %v125_v28 }
  0x3e   :  { %351 = vmatpush.msra.mxu3 %v326_v2  ;;  %192 = vmatpush.msra.mxu1 %v123_v29 }
  0x3f   :  { %161 = vmatmul.f32.gmra.mxu0 %v917_v15 }
  0x40   :  { %352 = vmatpush.msra.mxu3 %v325_v3  ;;  %193 = vmatpush.msra.mxu1 %v121_v31 }
  0x42   :  { %353 = vmatpush.msra.mxu3 %v324_v4  ;;  %194 = vmatpush.msra.mxu1 %v119_v34 }
  0x44   :  { %354 = vmatpush.msra.mxu3 %v323_v5  ;;  %195 = vmatpush.msra.mxu1 %v117_v37 }
  0x46   :  { %196 = vmatpush.msra.mxu1 %v115_v39 }
  0x47   :  { %164 = vmatmul.f32.gmra.mxu0 %v919_v16 }
  0x48   :  { %197 = vmatpush.msra.mxu1 %v113_v40 }
  0x4a   :  { %198 = vmatpush.msra.mxu1 %v111_v44 }
  0x4b   :  { %199 = vmatmul.f32.vlgmr.msra.gmra.mxu1 %v915_v14 }
  0x4f   :  { %167 = vmatmul.f32.gmra.mxu0 %v921_v17 }
  0x53   :  { %202 = vmatmul.f32.gmra.mxu1 %v917_v15 }
  0x57   :  { %170 = vmatmul.f32.gmra.mxu0 %v926_v23 }
  0x5b   :  { %205 = vmatmul.f32.gmra.mxu1 %v919_v16 }
  0x5f   :  { %173 = vmatmul.f32.gmra.mxu0 %v931_v30 }
  0x63   :  { %208 = vmatmul.f32.gmra.mxu1 %v921_v17 }
  0x67   :  { %176 = vmatmul.f32.gmra.mxu0 %v935_v35 }
  0x6b   :  { %211 = vmatmul.f32.gmra.mxu1 %v926_v23 }
  0x6f   :  { %179 = vmatmul.f32.gmra.mxu0 %v939_v42 }
  0x73   :  { %214 = vmatmul.f32.gmra.mxu1 %v931_v30 }
  0x7b   :  { %217 = vmatmul.f32.gmra.mxu1 %v935_v35 }
  0x83   :  { %220 = vmatmul.f32.gmra.mxu1 %v939_v42 }
  0xb4   :  { %v159_v6 = vpop.f32.mrf.mxu0 }
  0xba   :  { %v287_v11 = vpop.f32.mrf.mxu2 }
  0xbb   :  { %v954_v12 = vmul.f32 0.5, %v287_v11 }
  0xbc   :  { %v162_v13 = vpop.f32.mrf.mxu0 }
  0xbd   :  { %v299_v19 = vperm.slane %v954_v12, 0  ;;  %v292_v22 = vrot.slane %v954_v12, 1  ;;  %v293_v33 = vrot.slane %v954_v12, 2  ;;  %v294_v43 = vrot.slane %v954_v12, 3 }
  0xbe   :  { %v295_v48 = vrot.slane %v954_v12, 4  ;;  %v296_v52 = vrot.slane %v954_v12, 5  ;;  %v297_v14 = vrot.slane %v954_v12, 6  ;;  %v298_v15 = vrot.slane %v954_v12, 7 }
  0xbf   :  { %v315_v24 = vmul.f32 %v299_v19, %v159_v6  ;;  %v300_v26 = vperm.slane %v292_v22, 0  ;;  %v301_v38 = vperm.slane %v293_v33, 0  ;;  %v302_v45 = vperm.slane %v294_v43, 0 }
  0xc0   :  { %v303_v49 = vperm.slane %v295_v48, 0  ;;  %v304_v53 = vperm.slane %v296_v52, 0  ;;  %v305_v56 = vperm.slane %v297_v14, 0  ;;  %v306_v59 = vperm.slane %v298_v15, 0 }
  0xc1   :  { %355 = vmatmul.f32.vlgmr.msra.gmra.mxu3 %v315_v24  ;;  %v316_v32 = vmul.f32 %v300_v26, %v162_v13 }
  0xc4   :  { %v165_v27 = vpop.f32.mrf.mxu0 }
  0xc5   :  { %v317_v41 = vmul.f32 %v301_v38, %v165_v27 }
  0xc8   :  { %v972_v24 = vpop.f32.mrf.mxu1 }
  0xc9   :  { %358 = vmatmul.f32.gmra.mxu3 %v316_v32 }
  0xcc   :  { %v168_v36 = vpop.f32.mrf.mxu0 }
  0xcd   :  { %v318_v47 = vmul.f32 %v302_v45, %v168_v36 }
  0xd0   :  { %v974_v40 = vpop.f32.mrf.mxu1 }
  0xd1   :  { %361 = vmatmul.f32.gmra.mxu3 %v317_v41 }
  0xd4   :  { %v171_v46 = vpop.f32.mrf.mxu0 }
  0xd5   :  { %v319_v50 = vmul.f32 %v303_v49, %v171_v46 }
  0xd9   :  { %364 = vmatmul.f32.gmra.mxu3 %v318_v47 }
  0xdc   :  { %v174_v51 = vpop.f32.mrf.mxu0 }
  0xdd   :  { %v320_v54 = vmul.f32 %v304_v53, %v174_v51 }
  0xe1   :  { %367 = vmatmul.f32.gmra.mxu3 %v319_v50 }
  0xe4   :  { %v177_v55 = vpop.f32.mrf.mxu0 }
  0xe5   :  { %v321_v57 = vmul.f32 %v305_v56, %v177_v55 }
  0xe9   :  { %370 = vmatmul.f32.gmra.mxu3 %v320_v54 }
  0xec   :  { %v180_v58 = vpop.f32.mrf.mxu0 }
  0xed   :  { %v322_v60 = vmul.f32 %v306_v59, %v180_v58 }
  0xf1   :  { %373 = vmatmul.f32.gmra.mxu3 %v321_v57 }
  0xf9   :  { %376 = vmatmul.f32.gmra.mxu3 %v322_v60 }
 0x144   :  { %v356_v16 = vpop.f32.mrf.mxu3 }
 0x145   :  { %v380_v61 = vrot.slane %v356_v16, 4 }
 0x147   :  { %v381_v17 = vmax.f32 %v356_v16, %v380_v61  ;;  %v990_v61 = vpop.f32.mrf.mxu1 }
 0x149   :  { %v382_v0 = vrot.slane %v381_v17, 2 }
 0x14b   :  { %v383_v3 = vmax.f32 %v381_v17, %v382_v0 }
 0x14c   :  { %v359_v62 = vpop.f32.mrf.mxu3 }
 0x14d   :  { %v386_v63 = vrot.slane %v359_v62, 4  ;;  %v384_v6 = vrot.slane %v383_v3, 1 }
 0x14f   :  { %v387_v1 = vmax.f32 %v359_v62, %v386_v63  ;;  %v385_v9 = vmax.f32 %v383_v3, %v384_v6 }
 0x151   :  { %v388_v2 = vrot.slane %v387_v1, 2  ;;  %v428_v13 = vsub.f32 %v356_v16, %v385_v9  ;;  %v586_v9 = vld [vmem:[#allocation8 + $0x70] sm:$0xff] }
 0x153   :  { %v389_v4 = vmax.f32 %v387_v1, %v388_v2  ;;  %v436_v25 = vmul.f32 1.442695, %v428_v13  ;;  %v585_v13 = vld [vmem:[#allocation8 + $0x68] sm:$0xff] }
 0x154   :  { %v362_v23 = vpop.f32.mrf.mxu3 }
 0x155   :  { %v392_v5 = vrot.slane %v362_v23, 4  ;;  %v390_v8 = vrot.slane %v389_v4, 1  ;;  %659 = vpow2.f32 %v436_v25 }
 0x157   :  { %v393_v7 = vmax.f32 %v362_v23, %v392_v5  ;;  %v391_v10 = vmax.f32 %v389_v4, %v390_v8 }
 0x159   :  { %v394_v30 = vrot.slane %v393_v7, 2  ;;  %v429_v20 = vsub.f32 %v359_v62, %v391_v10 }
 0x15b   :  { %v395_v35 = vmax.f32 %v393_v7, %v394_v30  ;;  %v438_v27 = vmul.f32 1.442695, %v429_v20  ;;  %v976_v43 = vpop.eup %659 }
 0x15c   :  { %v365_v42 = vpop.f32.mrf.mxu3  ;;  %v452_v50 = vrot.slane %v976_v43, 4 }
 0x15d   :  { %v396_v11 = vrot.slane %v395_v35, 1  ;;  %v398_v12 = vrot.slane %v365_v42, 4  ;;  %661 = vpow2.f32 %v438_v27 }
 0x15e   :  { %v453_v57 = vadd.f32 %v976_v43, %v452_v50 }
 0x15f   :  { %v397_v18 = vmax.f32 %v395_v35, %v396_v11  ;;  %v399_v19 = vmax.f32 %v365_v42, %v398_v12 }
 0x160   :  { %v454_v1 = vrot.slane %v453_v57, 2 }
 0x161   :  { %v430_v21 = vsub.f32 %v362_v23, %v397_v18  ;;  %v400_v22 = vrot.slane %v399_v19, 2  ;;  %v587_v23 = vld [vmem:[#allocation8 + $0x78] sm:$0xff] }
 0x162   :  { %608 = vmatpush.msrb.mxu2 %v587_v23  ;;  %v455_v35 = vadd.f32 %v454_v1, %v453_v57  ;;  %v580_v57 = vld [vmem:[#allocation8 + $0x40] sm:$0xff] }
 0x163   :  { %v401_v26 = vmax.f32 %v399_v19, %v400_v22  ;;  %v440_v29 = vmul.f32 1.442695, %v430_v21  ;;  %v978_v46 = vpop.eup %661  ;;  %v998_v22 = vpop.f32.mrf.mxu1 }
 0x164   :  { %v368_v28 = vpop.f32.mrf.mxu3  ;;  %v458_v53 = vrot.slane %v978_v46, 4  ;;  %609 = vmatpush.msrb.mxu2 %v586_v9  ;;  %v456_v27 = vrot.slane %v455_v35, 1 }
 0x165   :  { %v402_v31 = vrot.slane %v401_v26, 1  ;;  %v404_v32 = vrot.slane %v368_v28, 4  ;;  %663 = vpow2.f32 %v440_v29 }
 0x166   :  { %v459_v16 = vadd.f32 %v978_v46, %v458_v53  ;;  %610 = vmatpush.msrb.mxu2 %v585_v13 }
 0x167   :  { %v403_v33 = vmax.f32 %v401_v26, %v402_v31  ;;  %v405_v34 = vmax.f32 %v368_v28, %v404_v32  ;;  %v584_v26 = vld [vmem:[#allocation8 + $0x60] sm:$0xff] }
 0x168   :  { %v460_v4 = vrot.slane %v459_v16, 2  ;;  %611 = vmatpush.msrb.mxu2 %v584_v26 }
 0x169   :  { %v431_v36 = vsub.f32 %v365_v42, %v403_v33  ;;  %v406_v37 = vrot.slane %v405_v34, 2  ;;  %v583_v33 = vld [vmem:[#allocation8 + $0x58] sm:$0xff] }
 0x16a   :  { %v461_v12 = vadd.f32 %v460_v4, %v459_v16  ;;  %612 = vmatpush.msrb.mxu2 %v583_v33  ;;  %v579_v16 = vld [vmem:[#allocation8 + $0x38] sm:$0xff]  ;;  %v577_v4 = vld [vmem:[#allocation8 + $0x28] sm:$0xff] }
 0x16b   :  { %v442_v38 = vmul.f32 1.442695, %v431_v36  ;;  %v407_v39 = vmax.f32 %v405_v34, %v406_v37  ;;  %v980_v47 = vpop.eup %663 }
 0x16c   :  { %v371_v41 = vpop.f32.mrf.mxu3  ;;  %v464_v54 = vrot.slane %v980_v47, 4  ;;  %v462_v32 = vrot.slane %v461_v12, 1 }
 0x16d   :  { %665 = vpow2.f32 %v442_v38  ;;  %v408_v44 = vrot.slane %v407_v39, 1  ;;  %v410_v45 = vrot.slane %v371_v41, 4 }
 0x16e   :  { %v465_v17 = vadd.f32 %v980_v47, %v464_v54 }
 0x16f   :  { %v409_v48 = vmax.f32 %v407_v39, %v408_v44  ;;  %v411_v49 = vmax.f32 %v371_v41, %v410_v45  ;;  %v582_v44 = vld [vmem:[#allocation8 + $0x50] sm:$0xff]  ;;  %v457_v45 = vadd.f32 %v456_v27, %v455_v35 }
 0x170   :  { %v466_v5 = vrot.slane %v465_v17, 2  ;;  %613 = vmatpush.msrb.mxu2 %v582_v44 }
 0x171   :  { %v432_v51 = vsub.f32 %v368_v28, %v409_v48  ;;  %v412_v52 = vrot.slane %v411_v49, 2 }
 0x172   :  { %v467_v19 = vadd.f32 %v466_v5, %v465_v17 }
 0x173   :  { %v985_v14 = vpop.eup %665  ;;  %v444_v55 = vmul.f32 1.442695, %v432_v51  ;;  %v413_v56 = vmax.f32 %v411_v49, %v412_v52  ;;  %v463_v51 = vadd.f32 %v462_v32, %v461_v12  ;;  %v581_v52 = vld [vmem:[#allocation8 + $0x48] sm:$0xff]  ;;  %v572_v32 = vld [vmem:[#allocation8] sm:$0xff] }
 0x174   :  { %v374_v15 = vpop.f32.mrf.mxu3  ;;  %v470_v58 = vrot.slane %v985_v14, 4  ;;  %v468_v36 = vrot.slane %v467_v19, 1  ;;  %614 = vmatpush.msrb.mxu2 %v581_v52 }
 0x175   :  { %667 = vpow2.f32 %v444_v55  ;;  %v414_v59 = vrot.slane %v413_v56, 1  ;;  %v416_v60 = vrot.slane %v374_v15, 4 }
 0x176   :  { %v471_v0 = vadd.f32 %v985_v14, %v470_v58  ;;  %v469_v54 = vadd.f32 %v468_v36, %v467_v19  ;;  %615 = vmatpush.msrb.mxu2 %v580_v57 }
 0x177   :  { %v415_v62 = vmax.f32 %v413_v56, %v414_v59  ;;  %v417_v63 = vmax.f32 %v374_v15, %v416_v60  ;;  %v212_v60 = vpop.f32.mrf.mxu1 }
 0x178   :  { %v472_v30 = vrot.slane %v471_v0, 2  ;;  %616 = vmatpush.msrb.mxu2 %v579_v16 }
 0x179   :  { %v433_v2 = vsub.f32 %v371_v41, %v415_v62  ;;  %v418_v3 = vrot.slane %v417_v63, 2 }
 0x17a   :  { %v473_v25 = vadd.f32 %v472_v30, %v471_v0  ;;  %v578_v0 = vld [vmem:[#allocation8 + $0x30] sm:$0xff]  ;;  %v576_v30 = vld [vmem:[#allocation8 + $0x20] sm:$0xff] }
 0x17b   :  { %v994_v6 = vpop.eup %667  ;;  %v446_v7 = vmul.f32 1.442695, %v433_v2  ;;  %v419_v8 = vmax.f32 %v417_v63, %v418_v3  ;;  %617 = vmatpush.msrb.mxu2 %v578_v0 }
 0x17c   :  { %v377_v10 = vpop.f32.mrf.mxu3  ;;  %v476_v42 = vrot.slane %v994_v6, 4  ;;  %v474_v41 = vrot.slane %v473_v25, 1 }
 0x17d   :  { %669 = vpow2.f32 %v446_v7  ;;  %v420_v11 = vrot.slane %v419_v8, 1  ;;  %v422_v18 = vrot.slane %v377_v10, 4  ;;  %618 = vmatpush.msrb.mxu2 %v577_v4 }
 0x17e   :  { %v477_v20 = vadd.f32 %v994_v6, %v476_v42  ;;  %v475_v56 = vadd.f32 %v474_v41, %v473_v25  ;;  %v575_v42 = vld [vmem:[#allocation8 + $0x18] sm:$0xff] }
 0x17f   :  { %v421_v21 = vmax.f32 %v419_v8, %v420_v11  ;;  %v423_v28 = vmax.f32 %v377_v10, %v422_v18  ;;  %619 = vmatpush.msrb.mxu2 %v576_v30  ;;  %v215_v19 = vpop.f32.mrf.mxu1 }
 0x180   :  { %v478_v29 = vrot.slane %v477_v20, 2 }
 0x181   :  { %v434_v31 = vsub.f32 %v374_v15, %v421_v21  ;;  %v424_v34 = vrot.slane %v423_v28, 2  ;;  %620 = vmatpush.msrb.mxu2 %v575_v42 }
 0x182   :  { %v479_v37 = vadd.f32 %v478_v29, %v477_v20  ;;  %v574_v20 = vld [vmem:[#allocation8 + $0x10] sm:$0xff] }
 0x183   :  { %v1000_v38 = vpop.eup %669  ;;  %v448_v39 = vmul.f32 1.442695, %v434_v31  ;;  %v425_v48 = vmax.f32 %v423_v28, %v424_v34  ;;  %621 = vmatpush.msrb.mxu2 %v574_v20  ;;  %v573_v28 = vld [vmem:[#allocation8 + $0x8] sm:$0xff] }
 0x184   :  { %v480_v49 = vrot.slane %v479_v37, 1  ;;  %v482_v50 = vrot.slane %v1000_v38, 4 }
 0x185   :  { %671 = vpow2.f32 %v448_v39  ;;  %v426_v53 = vrot.slane %v425_v48, 1  ;;  %622 = vmatpush.msrb.mxu2 %v573_v28 }
 0x186   :  { %v483_v55 = vadd.f32 %v1000_v38, %v482_v50  ;;  %673 = vrcp.f32 %v457_v45  ;;  %v481_v58 = vadd.f32 %v480_v49, %v479_v37 }
 0x187   :  { %v427_v15 = vmax.f32 %v425_v48, %v426_v53  ;;  %675 = vrcp.f32 %v463_v51  ;;  %623 = vmatpush.msrb.mxu2 %v572_v32  ;;  %v218_v51 = vpop.f32.mrf.mxu1 }
 0x188   :  { %v484_v59 = vrot.slane %v483_v55, 2  ;;  %677 = vrcp.f32 %v469_v54 }
 0x189   :  { %v435_v17 = vsub.f32 %v377_v10, %v427_v15  ;;  %679 = vrcp.f32 %v475_v56 }
 0x18a   :  { %v485_v62 = vadd.f32 %v484_v59, %v483_v55  ;;  %681 = vrcp.f32 %v481_v58 }
 0x18b   :  { %v1004_v63 = vpop.eup %671  ;;  %v450_v1 = vmul.f32 1.442695, %v435_v17 }
 0x18c   :  { %v486_v2 = vrot.slane %v485_v62, 1  ;;  %v488_v3 = vrot.slane %v1004_v63, 4  ;;  %v674_v23 = vpop.eup %673 }
 0x18d   :  { %683 = vpow2.f32 %v450_v1  ;;  %v676_v8 = vpop.eup %675  ;;  %v508_v25 = vmul.f32 %v674_v23, %v976_v43 }
 0x18e   :  { %v487_v5 = vadd.f32 %v486_v2, %v485_v62  ;;  %v489_v7 = vadd.f32 %v1004_v63, %v488_v3  ;;  %v678_v9 = vpop.eup %677  ;;  %v509_v12 = vmul.f32 %v676_v8, %v978_v46 }
 0x18f   :  { %v680_v10 = vpop.eup %679  ;;  %v510_v18 = vmul.f32 %v678_v9, %v980_v47  ;;  %v516_v43 = vmul.f32 %v508_v25, %v972_v24 }
 0x190   :  { %685 = vrcp.f32 %v487_v5  ;;  %v490_v35 = vrot.slane %v489_v7, 2  ;;  %v682_v11 = vpop.eup %681  ;;  %v511_v26 = vmul.f32 %v680_v10, %v985_v14  ;;  %v517_v46 = vmul.f32 %v509_v12, %v974_v40 }
 0x191   :  { %v512_v29 = vmul.f32 %v682_v11, %v994_v6  ;;  %v518_v47 = vmul.f32 %v510_v18, %v990_v61  ;;  %v524_v40 = vrot.slane %v516_v43, 4 }
 0x192   :  { %v491_v13 = vadd.f32 %v490_v35, %v489_v7  ;;  %v519_v14 = vmul.f32 %v511_v26, %v998_v22  ;;  %v530_v41 = vrot.slane %v517_v46, 4 }
 0x193   :  { %v684_v21 = vpop.eup %683  ;;  %v520_v39 = vmul.f32 %v512_v29, %v212_v60  ;;  %v536_v45 = vrot.slane %v518_v47, 4  ;;  %v525_v55 = vadd.f32 %v524_v40, %v516_v43 }
 0x194   :  { %v492_v27 = vrot.slane %v491_v13, 1  ;;  %v494_v31 = vrot.slane %v684_v21, 4  ;;  %v542_v49 = vrot.slane %v519_v14, 4 }
 0x195   :  { %v548_v50 = vrot.slane %v520_v39, 4  ;;  %v537_v54 = vadd.f32 %v536_v45, %v518_v47  ;;  %v526_v17 = vrot.slane %v525_v55, 2 }
 0x196   :  { %v686_v33 = vpop.eup %685  ;;  %v493_v34 = vadd.f32 %v492_v27, %v491_v13  ;;  %v495_v37 = vadd.f32 %v684_v21, %v494_v31  ;;  %v543_v56 = vadd.f32 %v542_v49, %v519_v14 }
 0x197   :  { %v513_v36 = vmul.f32 %v686_v33, %v1000_v38  ;;  %v531_v38 = vadd.f32 %v530_v41, %v517_v46  ;;  %v549_v57 = vadd.f32 %v548_v50, %v520_v39  ;;  %v538_v60 = vrot.slane %v537_v54, 2 }
 0x198   :  { %687 = vrcp.f32 %v493_v34  ;;  %v496_v6 = vrot.slane %v495_v37, 2  ;;  %v544_v62 = vrot.slane %v543_v56, 2  ;;  %v527_v7 = vadd.f32 %v526_v17, %v525_v55 }
 0x199   :  { %v521_v44 = vmul.f32 %v513_v36, %v215_v19  ;;  %v532_v58 = vrot.slane %v531_v38, 2  ;;  %v550_v0 = vrot.slane %v549_v57, 2  ;;  %v539_v23 = vadd.f32 %v538_v60, %v537_v54 }
 0x19a   :  { %v497_v48 = vadd.f32 %v496_v6, %v495_v37  ;;  %v545_v8 = vadd.f32 %v544_v62, %v543_v56  ;;  %v528_v13 = vrot.slane %v527_v7, 1 }
 0x19b   :  { %v554_v53 = vrot.slane %v521_v44, 4  ;;  %v533_v2 = vadd.f32 %v532_v58, %v531_v38  ;;  %v551_v9 = vadd.f32 %v550_v0, %v549_v57  ;;  %v540_v11 = vrot.slane %v539_v23, 1 }
 0x19c   :  { %v498_v61 = vrot.slane %v497_v48, 1  ;;  %v546_v18 = vrot.slane %v545_v8, 1  ;;  %v529_v31 = vadd.f32 %v528_v13, %v527_v7 }
 0x19d   :  { %v555_v59 = vadd.f32 %v554_v53, %v521_v44  ;;  %v534_v35 = vrot.slane %v533_v2, 1  ;;  %v552_v20 = vrot.slane %v551_v9, 1  ;;  %v541_v28 = vadd.f32 %v540_v11, %v539_v23 }
 0x19e   :  { %v688_v52 = vpop.eup %687  ;;  %v499_v22 = vadd.f32 %v498_v61, %v497_v48  ;;  %v547_v32 = vadd.f32 %v546_v18, %v545_v8  ;;  %v658_v48 = vld [vmem:[%s1036_s4] ss:$0 sm:$0xff] }
 0x19f   :  { %v514_v24 = vmul.f32 %v688_v52, %v1004_v63  ;;  %v556_v3 = vrot.slane %v555_v59, 2  ;;  %v221_v63 = vpop.f32.mrf.mxu1  ;;  %v535_v25 = vadd.f32 %v534_v35, %v533_v2  ;;  %v553_v46 = vadd.f32 %v552_v20, %v551_v9 }
 0x1a0   :  { %689 = vrcp.f32 %v499_v22 }
 0x1a1   :  { %v522_v15 = vmul.f32 %v514_v24, %v218_v51  ;;  %v557_v10 = vadd.f32 %v556_v3, %v555_v59 }
 0x1a3   :  { %v560_v16 = vrot.slane %v522_v15, 4  ;;  %v558_v26 = vrot.slane %v557_v10, 1 }
 0x1a5   :  { %v561_v1 = vadd.f32 %v560_v16, %v522_v15  ;;  %v559_v34 = vadd.f32 %v558_v26, %v557_v10 }
 0x1a6   :  { %v690_v4 = vpop.eup %689 }
 0x1a7   :  { %v562_v5 = vrot.slane %v561_v1, 2  ;;  %v515_v30 = vmul.f32 %v690_v4, %v684_v21  ;;  %v600_v21 = vsel %vm249_vm0, %v535_v25, %v529_v31 }
 0x1a8   :  { %v601_v36 = vsel %vm252_vm1, %v541_v28, %v600_v21 }
 0x1a9   :  { %v523_v42 = vmul.f32 %v515_v30, %v221_v63  ;;  %v563_v12 = vadd.f32 %v562_v5, %v561_v1  ;;  %v602_v14 = vsel %vm255_vm2, %v547_v32, %v601_v36 }
 0x1aa   :  { %v603_v39 = vsel %vm258_vm3, %v553_v46, %v602_v14 }
 0x1ab   :  { %v566_v19 = vrot.slane %v523_v42, 4  ;;  %v564_v29 = vrot.slane %v563_v12, 1  ;;  %v604_v41 = vsel %vm261_vm4, %v559_v34, %v603_v39 }
 0x1ad   :  { %v567_v27 = vadd.f32 %v566_v19, %v523_v42  ;;  %v565_v37 = vadd.f32 %v564_v29, %v563_v12 }
 0x1af   :  { %v568_v33 = vrot.slane %v567_v27, 2  ;;  %v605_v44 = vsel %vm264_vm5, %v565_v37, %v604_v41 }
 0x1b1   :  { %v569_v47 = vadd.f32 %v568_v33, %v567_v27 }
 0x1b3   :  { %v570_v43 = vrot.slane %v569_v47, 1 }
 0x1b5   :  { %v571_v6 = vadd.f32 %v570_v43, %v569_v47 }
 0x1b7   :  { %v606_v45 = vsel %vm267_vm6, %v571_v6, %v605_v44 }
 0x1b8   :  { %624 = vmatmul.f32.vlgmr.msrb.gmra.mxu2 %v606_v45 }
 0x23b   :  { %v625_v40 = vpop.f32.mrf.mxu2 }
 0x23c   :  { %v626_v49 = vadd.f32 %v658_v48, %v625_v40 }
 0x23e   :  { %628 = vst [vmem:[#allocation11] sm:$0xff] %v626_v49 }
 0x23f   :  { %639 = dma.vmem_to_hbm [thread:$0]  %s635_s24, 128, %s637_s27, [#allocation4]  }
 0x240   :  { %841 = dma.done.wait [#allocation4], 128  }
 0x241   :  { %842 = vsyncadd [#allocation4], 4294967168 }
 0x242   :  { %644 = vsyncpa [#allocation3], 1 }
 0x243   :  { %645 = vsyncpa [#allocation6], 1 }
 0x244   :  { %646 = vsyncpa [#allocation9], 1 }
 0x245   :  { %647 = vsyncpa [#allocation4], 1 }

</bundles_post_ra>
